<compile_context>
chip_gen: v7x
topology: tpu7x:2x2x1
jax: 0.10.0
libtpu: 0.0.40
codegen_flags: <defaults>
</compile_context>

<pallas_src>
import jax
import jax.numpy as jnp
import numpy as np
from jax import lax
from jax.experimental import pallas as pl
from jax.experimental.pallas import tpu as pltpu

LANE = 128            # all feature dims are padded to a multiple of this (lane quantum)
BATCH_QUANTUM = 16    # padded batch multiple: >=16 sublanes for the bf16 per-step store
VMEM_LIMIT = 64 * 1024 * 1024   # explicit scoped-VMEM budget (fits v7x's 64 MiB physical)


# ---------------------------------------------------------------------------
# Small helpers
# ---------------------------------------------------------------------------
def _round_up(x, m):
    return ((x + m - 1) // m) * m


def _pick_tile(dim, cap, align=LANE, prefer=256):
    """Largest tile <= cap dividing dim, preferring multiples of 256 (MXU-aligned).

    `dim` must be a multiple of `align` (callers pad feature dims), so there is no
    full-extent fallback.
    """
    if dim <= cap:
        return dim
    for q in (prefer, align):
        t = (cap // q) * q
        while t >= q:
            if dim % t == 0:
                return t
            t -= q
    raise ValueError(f"dim={dim} must be a multiple of {align}")


def _pad_gate_cols(w, H, H_p):
    """Pad each of the 4 LSTM gate blocks along the last axis from H to H_p with zeros."""
    if H == H_p:
        return w
    parts = [w[..., g * H:(g + 1) * H] for g in range(4)]
    pad = [(0, 0)] * (w.ndim - 1) + [(0, H_p - H)]
    return jnp.concatenate([jnp.pad(p, pad) for p in parts], axis=-1)


# ---------------------------------------------------------------------------
# Pallas kernels
# ---------------------------------------------------------------------------
def matmul_bias_kernel(x_ref, w_ref, b_ref, o_ref, acc_ref):
    """Tiled (N, K) @ (K, M) + bias with f32 accumulation; grid = (N/tm, M/tn, K/tk)."""
    k = pl.program_id(2)

    @pl.when(k == 0)
    def _():
        acc_ref[...] = jnp.zeros_like(acc_ref)

    acc_ref[...] += jnp.dot(x_ref[...], w_ref[...],
                            preferred_element_type=jnp.float32)

    @pl.when(k == pl.num_programs(2) - 1)
    def _():
        o_ref[...] = (acc_ref[...] + b_ref[...]).astype(o_ref.dtype)


def _make_lstm_kernel(T, Tc, H, needs_mask, unroll):
    """LSTM recurrence over a chunk of Tc timesteps; grid = (batch_blocks, T/Tc).

    pre_ref holds the precomputed x @ W_ih + b in bf16; the resident hT/cT output
    blocks carry the running f32 state across time chunks (no scratch buffers).
    """
    def kernel(pre_ref, h0_ref, c0_ref, whh_ref, out_ref, hT_ref, cT_ref):
        @pl.when(pl.program_id(1) == 0)
        def _():
            hT_ref[...] = h0_ref[...]
            cT_ref[...] = c0_ref[...]

        whh = whh_ref[...]                       # (H, 4H) bf16, hoisted out of the time loop
        t_base = pl.program_id(1) * Tc

        def step(t, carry):
            h, c = carry                         # f32 state carried in vregs
            gates = pre_ref[t].astype(jnp.float32) + jnp.dot(
                h.astype(jnp.bfloat16), whh, preferred_element_type=jnp.float32)
            # sigmoid(x) == 0.5*tanh(0.5*x)+0.5 : one EUP op instead of exp + divide.
            i_g = 0.5 * jnp.tanh(0.5 * gates[:, 0 * H:1 * H]) + 0.5
            f_g = 0.5 * jnp.tanh(0.5 * gates[:, 1 * H:2 * H]) + 0.5
            g_g = jnp.tanh(gates[:, 2 * H:3 * H])
            o_g = 0.5 * jnp.tanh(0.5 * gates[:, 3 * H:4 * H]) + 0.5
            c_new = f_g * c + i_g * g_g
            h_new = o_g * jnp.tanh(c_new)
            out_ref[t] = h_new.astype(out_ref.dtype)      # bf16 per-timestep output
            if needs_mask:                       # only traced when T % Tc != 0 (tail chunk)
                valid = (t_base + t) < T
                h_new = jnp.where(valid, h_new, h)
                c_new = jnp.where(valid, c_new, c)
            return (h_new, c_new)

        h_last, c_last = lax.fori_loop(0, Tc, step, (hT_ref[...], cT_ref[...]),
                                       unroll=unroll)
        hT_ref[...] = h_last
        cT_ref[...] = c_last

    return kernel


# ---------------------------------------------------------------------------
# Wrappers
# ---------------------------------------------------------------------------
def matmul_bias(x, w, b, *, out_dtype, tm_cap=256, tn_cap=512, tk_cap=2048):
    """x: (N, K) bf16, w: (K, M) bf16, b: (1, M) f32 -> (N, M) out_dtype.

    Feature dims K and M must be multiples of 128 (wrapper pads parameters). Rows are
    padded internally to a multiple of the chosen MXU-aligned row tile.
    """
    N, K = x.shape
    Kw, M = w.shape
    assert K == Kw and b.shape == (1, M)
    assert K % LANE == 0 and M % LANE == 0, "feature dims must be padded to 128"

    # MXU-aligned row tile (>=16 rows for bf16 sublane packing); pad rows so grid divides.
    tm = tm_cap if N >= tm_cap else _round_up(N, 16)
    Np = _round_up(N, tm)
    if Np != N:
        x = jnp.pad(x, ((0, Np - N), (0, 0)))
    tn = _pick_tile(M, tn_cap)
    tk = _pick_tile(K, tk_cap)
    grid = (Np // tm, M // tn, K // tk)

    # When M <= tn_cap and K <= tk_cap the weight has a single (k, j) block, so Pallas
    # DMAs it once and keeps it resident across the whole row grid.
    # TODO(synk): also single-buffer grid-constant operands via pipeline_mode=pl.Buffered(1)
    # once verified on the target jax version (halves their VMEM footprint on v7x).
    out = pl.pallas_call(
        matmul_bias_kernel,
        out_shape=jax.ShapeDtypeStruct((Np, M), out_dtype),
        grid=grid,
        in_specs=[
            pl.BlockSpec((tm, tk), lambda i, j, k: (i, k)),
            pl.BlockSpec((tk, tn), lambda i, j, k: (k, j)),
            pl.BlockSpec((1, tn), lambda i, j, k: (0, j)),
        ],
        out_specs=pl.BlockSpec((tm, tn), lambda i, j, k: (i, j)),
        scratch_shapes=[pltpu.VMEM((tm, tn), jnp.float32)],
        compiler_params=pltpu.CompilerParams(
            dimension_semantics=("parallel", "parallel", "arbitrary"),
            vmem_limit_bytes=VMEM_LIMIT),
    )(x, w, b)
    return out[:N] if Np != N else out


def lstm_recurrence(pre, h0, c0, w_hh, T):
    """pre: (T, Bp, 4H) bf16 -> (out (T, Bp, H) bf16, hT (Bp, H) f32, cT (Bp, H) f32)."""
    _, Bp, G = pre.shape
    H = h0.shape[-1]
    assert G == 4 * H and H % LANE == 0 and Bp % BATCH_QUANTUM == 0

    # Keep the double-buffered bf16 pre block modest so the recurrence fits v7x's VMEM.
    per_step_bytes = Bp * G * pre.dtype.itemsize
    tc_cap = 16 if 2 * 16 * per_step_bytes <= (8 << 20) else 8
    Tc = min(T, tc_cap)
    nt = pl.cdiv(T, Tc)
    Tp = nt * Tc
    if Tp != T:
        pre = jnp.pad(pre, ((0, Tp - T), (0, 0), (0, 0)))   # tail is masked in-kernel

    # Megacore: split the batch across TensorCores when it is large enough (v7x has 2 TCs).
    nb = 2 if (Bp >= 256 and Bp % (2 * BATCH_QUANTUM) == 0) else 1
    Bb = Bp // nb

    kernel = _make_lstm_kernel(T, Tc, H, needs_mask=(Tp != T), unroll=min(Tc, 8))
    out_shapes = (
        jax.ShapeDtypeStruct((Tp, Bp, H), jnp.bfloat16),
        jax.ShapeDtypeStruct((Bp, H), jnp.float32),
        jax.ShapeDtypeStruct((Bp, H), jnp.float32),
    )
    out, hT, cT = pl.pallas_call(
        kernel,
        out_shape=out_shapes,
        grid=(nb, nt),
        in_specs=[
            pl.BlockSpec((Tc, Bb, G), lambda b, t: (t, b, 0)),   # precomputed gates (bf16)
            pl.BlockSpec((Bb, H), lambda b, t: (b, 0)),          # h0
            pl.BlockSpec((Bb, H), lambda b, t: (b, 0)),          # c0
            pl.BlockSpec((H, G), lambda b, t: (0, 0)),           # W_hh (bf16, grid-constant)
        ],
        out_specs=(
            pl.BlockSpec((Tc, Bb, H), lambda b, t: (t, b, 0)),   # per-timestep output
            pl.BlockSpec((Bb, H), lambda b, t: (b, 0)),          # resident running h
            pl.BlockSpec((Bb, H), lambda b, t: (b, 0)),          # resident running c
        ),
        compiler_params=pltpu.CompilerParams(
            dimension_semantics=("parallel", "arbitrary"),       # time axis is sequential
            vmem_limit_bytes=VMEM_LIMIT),
    )(pre, h0, c0, w_hh)
    if Tp != T:
        out = out[:T]
    return out, hT, cT


# ---------------------------------------------------------------------------
# Parameter padding (once, outside the forward pass)
# ---------------------------------------------------------------------------
def pad_params(params):
    """Zero-pad all feature dims to multiples of 128 so every kernel sees lane-dense tiles.

    Padded gate lanes produce c=0.5*0+0.5*0=0 and h=0 as long as their biases are zero and
    the initial padded h/c are zero, so the padded computation is numerically identical to
    the unpadded one on the valid lanes.
    """
    emb = params["embedding"]                     # (vocab, E) bf16
    V, E = emb.shape
    E_p = _round_up(E, LANE)
    out = {"embedding": jnp.pad(emb, ((0, 0), (0, E_p - E)))}

    lstm_p, hidden_sizes = [], []
    in_dim, in_dim_p = E, E_p
    for (w_ih, w_hh, b) in params["lstm"]:
        H = w_hh.shape[0]
        H_p = _round_up(H, LANE)
        hidden_sizes.append(H)
        w_ih_p = _pad_gate_cols(jnp.pad(w_ih, ((0, in_dim_p - in_dim), (0, 0))), H, H_p)
        w_hh_p = _pad_gate_cols(jnp.pad(w_hh, ((0, H_p - H), (0, 0))), H, H_p)
        b_p = _pad_gate_cols(b, H, H_p)
        lstm_p.append((w_ih_p, w_hh_p, b_p))
        in_dim, in_dim_p = H, H_p
    out["lstm"] = lstm_p

    H_last, Vd = params["w_dec"].shape
    V_p = _round_up(Vd, LANE)
    out["w_dec"] = jnp.pad(params["w_dec"], ((0, in_dim_p - H_last), (0, V_p - Vd)))
    out["b_dec"] = jnp.pad(params["b_dec"], (0, V_p - Vd))
    out["meta"] = {"vocab": Vd, "hidden_sizes": tuple(hidden_sizes)}
    return out


# ---------------------------------------------------------------------------
# Forward pass
# ---------------------------------------------------------------------------
def rnn_language_model_forward(tokens, hidden, pparams):
    """Mirrors RNNLanguageModel.forward(input, hidden).

    tokens: (T, B) int32; hidden: list of (h, c) per layer, each (B, H_l) f32.
    Returns (decoded (T, B, V) bf16 logits, new_hidden).  Throughput note: grow B toward
    the MXU row quantum (128 v5e / 256 v6e+) — the per-step (B,H)@(H,4H) matmul is the
    only MXU work inside the time loop.
    """
    meta = pparams["meta"]
    T, B = tokens.shape
    B_p = _round_up(B, BATCH_QUANTUM)
    if B_p != B:
        tokens = jnp.pad(tokens, ((0, 0), (0, B_p - B)))   # padded rows are sliced off

    # Encoder: embedding lookup (plain JAX gather); drop() is identity (eval / p=0).
    x = pparams["embedding"][tokens]                       # (T, B_p, E_p) bf16

    new_hidden = []
    for l, (w_ih, w_hh, b) in enumerate(pparams["lstm"]):
        h0, c0 = hidden[l]
        H = meta["hidden_sizes"][l]
        H_p = w_hh.shape[0]
        h0p = jnp.pad(h0, ((0, B_p - B), (0, H_p - H)))
        c0p = jnp.pad(c0, ((0, B_p - B), (0, H_p - H)))
        In_p = x.shape[-1]
        # Hoisted input projection (+ folded bias) over all T*B rows; bf16 output and a
        # grid-constant (resident) W_ih block (tn covers 4H, tk covers the input dim).
        pre = matmul_bias(x.reshape(T * B_p, In_p), w_ih, b.reshape(1, 4 * H_p),
                          out_dtype=jnp.bfloat16, tm_cap=256,
                          tn_cap=max(512, min(4 * H_p, 4096)),
                          tk_cap=max(512, min(In_p, 2048)))
        pre = pre.reshape(T, B_p, 4 * H_p)
        x, hT, cT = lstm_recurrence(pre, h0p, c0p, w_hh, T)   # x: (T, B_p, H_p) bf16
        new_hidden.append((hT[:B, :H], cT[:B, :H]))
    # self.drop(output): identity (eval mode).
    # TODO(synk): training-mode dropout not implemented (eval-mode identity only).

    H_last_p = x.shape[-1]
    # Decoder: larger row tile cuts W_dec re-streaming; bf16 logits halve the HBM write.
    decoded = matmul_bias(x.reshape(T * B_p, H_last_p), pparams["w_dec"],
                          pparams["b_dec"].reshape(1, -1),
                          out_dtype=jnp.bfloat16, tm_cap=512)
    V = meta["vocab"]
    decoded = decoded.reshape(T, B_p, -1)[:, :B, :V]
    return decoded, new_hidden


# ---------------------------------------------------------------------------
# Pure-JAX reference (mirrors the kernel numerics: bf16 matmul inputs / pre / activations,
# f32 accumulation and state)
# ---------------------------------------------------------------------------
def reference_forward(tokens, hidden, params):
    x = params["embedding"][tokens]
    T, B = tokens.shape
    new_hidden = []
    for l, (w_ih, w_hh, b) in enumerate(params["lstm"]):
        h0, c0 = hidden[l]
        H = h0.shape[-1]
        In = x.shape[-1]
        pre = (jnp.dot(x.reshape(T * B, In).astype(jnp.bfloat16), w_ih,
                       preferred_element_type=jnp.float32) + b)
        pre = pre.astype(jnp.bfloat16).reshape(T, B, 4 * H)   # kernel stores pre in bf16

        def step(carry, pre_t):
            h, c = carry
            g = pre_t.astype(jnp.float32) + jnp.dot(h.astype(jnp.bfloat16), w_hh,
                                                    preferred_element_type=jnp.float32)
            i = jax.nn.sigmoid(g[:, :H])
            f = jax.nn.sigmoid(g[:, H:2 * H])
            gg = jnp.tanh(g[:, 2 * H:3 * H])
            o = jax.nn.sigmoid(g[:, 3 * H:])
            c_new = f * c + i * gg
            h_new = o * jnp.tanh(c_new)
            return (h_new, c_new), h_new.astype(jnp.bfloat16)

        (hT, cT), ys = lax.scan(step, (h0, c0), pre)
        x = ys
        new_hidden.append((hT, cT))
    H_last = x.shape[-1]
    dec = (jnp.dot(x.reshape(T * B, H_last), params["w_dec"],
                   preferred_element_type=jnp.float32) + params["b_dec"])
    return dec.astype(jnp.bfloat16).reshape(T, B, -1), new_hidden


# ---------------------------------------------------------------------------
# Parameter construction (deterministic, PyTorch-like uniform init; weights in bf16)
# ---------------------------------------------------------------------------
def make_params(key, vocab, emb_size, hidden_sizes):
    keys = jax.random.split(key, 3 + 3 * len(hidden_sizes))
    params = {}
    params["embedding"] = jax.random.uniform(
        keys[0], (vocab, emb_size), jnp.float32, -0.1, 0.1).astype(jnp.bfloat16)
    lstm = []
    in_dim = emb_size
    for l, H in enumerate(hidden_sizes):
        kw1, kw2, kb = keys[3 + 3 * l], keys[4 + 3 * l], keys[5 + 3 * l]
        s = 1.0 / np.sqrt(H)
        w_ih = jax.random.uniform(kw1, (in_dim, 4 * H), jnp.float32, -s, s).astype(jnp.bfloat16)
        w_hh = jax.random.uniform(kw2, (H, 4 * H), jnp.float32, -s, s).astype(jnp.bfloat16)
        # PyTorch LSTM has b_ih and b_hh; their sum is equivalent -> single f32 bias.
        b = jax.random.uniform(kb, (4 * H,), jnp.float32, -s, s)
        lstm.append((w_ih, w_hh, b))
        in_dim = H
    params["lstm"] = lstm
    H_last = hidden_sizes[-1]
    s = 1.0 / np.sqrt(H_last)
    params["w_dec"] = jax.random.uniform(keys[1], (H_last, vocab),
                                         jnp.float32, -s, s).astype(jnp.bfloat16)
    params["b_dec"] = jax.random.uniform(keys[2], (vocab,), jnp.float32, -s, s)
    # TODO(synk): `tied` encoder/decoder weight sharing not wired in (untied variant).
    return params


def init_hidden(bsz, hidden_sizes):
    return [(jnp.zeros((bsz, H), jnp.float32),
             jnp.zeros((bsz, H), jnp.float32)) for H in hidden_sizes]


if __name__ == "__main__":
    vocab = 32
    emb_size = 32
    hidden_sizes = [32, 32]   # 2-layer stacked LSTM
    seq_len = 8
    batch = 2

    key = jax.random.PRNGKey(0)
    k_tok, k_par = jax.random.split(key)
    tokens = jax.random.randint(k_tok, (seq_len, batch), 0, vocab, jnp.int32)
    params = make_params(k_par, vocab, emb_size, hidden_sizes)
    pparams = pad_params(params)              # one-time lane/sublane padding of parameters
    hidden = init_hidden(batch, hidden_sizes)

    decoded, new_hidden = rnn_language_model_forward(tokens, hidden, pparams)
    decoded = jax.block_until_ready(decoded)
    for h, c in new_hidden:
        jax.block_until_ready(h)
        jax.block_until_ready(c)

    # Correctness check against a numerics-matched pure-JAX reference (unpadded params).
    ref_dec, ref_hidden = reference_forward(tokens, hidden, params)
    dec_np = np.asarray(decoded.astype(jnp.float32))
    ref_np = np.asarray(ref_dec.astype(jnp.float32))
    assert decoded.shape == (seq_len, batch, vocab)
    assert np.all(np.isfinite(dec_np))
    assert np.allclose(dec_np, ref_np, rtol=2e-2, atol=2e-2)
    for (h, c), (rh, rc) in zip(new_hidden, ref_hidden):
        assert np.allclose(np.asarray(h), np.asarray(rh), rtol=2e-2, atol=2e-2)
        assert np.allclose(np.asarray(c), np.asarray(rc), rtol=2e-2, atol=2e-2)

    print("KERNEL_OK")
</pallas_src>

<mosaic_0001>
module attributes {stable_mosaic.version = 11 : i64} {
  func.func @matmul_bias_kernel(%arg0: i32, %arg1: i32, %arg2: i32, %arg3: memref<128x128xbf16, #tpu.memory_space<vmem>>, %arg4: memref<128x512xbf16, #tpu.memory_space<vmem>>, %arg5: memref<1x512xf32, #tpu.memory_space<vmem>>, %arg6: memref<128x512xbf16, #tpu.memory_space<vmem>>, %arg7: memref<128x512xf32, #tpu.memory_space<vmem>>) attributes {dimension_semantics = [#tpu.dimension_semantics<parallel>, #tpu.dimension_semantics<parallel>, #tpu.dimension_semantics<arbitrary>], iteration_bounds = array<i64: 1, 1, 1>, scalar_prefetch = 0 : i64, scratch_operands = 1 : i64, tpu.core_type = #tpu.core_type<tc>, window_params = [{transform_indices = @transform_0, window_bounds = array<i64: 128, 128>}, {transform_indices = @transform_1, window_bounds = array<i64: 128, 512>}, {transform_indices = @transform_2, window_bounds = array<i64: 1, 512>}, {transform_indices = @transform_3, window_bounds = array<i64: 128, 512>}]} {
    %c0_i32 = arith.constant 0 : i32
    %0 = arith.cmpi eq, %arg2, %c0_i32 : i32
    %1 = arith.extui %0 : i1 to i32
    %c0_i32_0 = arith.constant 0 : i32
    %2 = arith.cmpi ne, %1, %c0_i32_0 : i32
    scf.if %2 {
      %cst_10 = arith.constant 0.000000e+00 : f32
      %12 = vector.broadcast %cst_10 : f32 to vector<128x512xf32>
      %c0_11 = arith.constant 0 : index
      %c0_12 = arith.constant 0 : index
      %13 = vector.load %arg7[%c0_11, %c0_12] : memref<128x512xf32, #tpu.memory_space<vmem>>, vector<128x512xf32>
      tpu.vector_store %arg7[%c0_11, %c0_12], %12 {strides = array<i32>} : memref<128x512xf32, #tpu.memory_space<vmem>>, vector<128x512xf32>,
    } else {
    }
    %c0 = arith.constant 0 : index
    %c0_1 = arith.constant 0 : index
    %3 = vector.load %arg7[%c0, %c0_1] : memref<128x512xf32, #tpu.memory_space<vmem>>, vector<128x512xf32>
    %c0_2 = arith.constant 0 : index
    %c0_3 = arith.constant 0 : index
    %4 = vector.load %arg3[%c0_2, %c0_3] : memref<128x128xbf16, #tpu.memory_space<vmem>>, vector<128x128xbf16>
    %c0_4 = arith.constant 0 : index
    %c0_5 = arith.constant 0 : index
    %5 = vector.load %arg4[%c0_4, %c0_5] : memref<128x512xbf16, #tpu.memory_space<vmem>>, vector<128x512xbf16>
    %cst = arith.constant dense<0.000000e+00> : vector<128x512xf32>
    %6 = tpu.matmul %4, %5, %cst {dimension_numbers = #tpu.dot_dimension_numbers<[1], [0], [0], [1], [0, 0, 1, 1], [], []>} : vector<128x128xbf16>, vector<128x512xbf16>, vector<128x512xf32> -> vector<128x512xf32>
    %7 = arith.addf %3, %6 : vector<128x512xf32>
    %c0_6 = arith.constant 0 : index
    %c0_7 = arith.constant 0 : index
    %8 = vector.load %arg7[%c0_6, %c0_7] : memref<128x512xf32, #tpu.memory_space<vmem>>, vector<128x512xf32>
    tpu.vector_store %arg7[%c0_6, %c0_7], %7 {strides = array<i32>} : memref<128x512xf32, #tpu.memory_space<vmem>>, vector<128x512xf32>,
    %c0_i32_8 = arith.constant 0 : i32
    %9 = arith.cmpi eq, %arg2, %c0_i32_8 : i32
    %10 = arith.extui %9 : i1 to i32
    %c0_i32_9 = arith.constant 0 : i32
    %11 = arith.cmpi ne, %10, %c0_i32_9 : i32
    scf.if %11 {
      %c0_10 = arith.constant 0 : index
      %c0_11 = arith.constant 0 : index
      %12 = vector.load %arg7[%c0_10, %c0_11] : memref<128x512xf32, #tpu.memory_space<vmem>>, vector<128x512xf32>
      %c0_12 = arith.constant 0 : index
      %c0_13 = arith.constant 0 : index
      %13 = vector.load %arg5[%c0_12, %c0_13] : memref<1x512xf32, #tpu.memory_space<vmem>>, vector<1x512xf32>
      %14 = vector.broadcast %13 : vector<1x512xf32> to vector<128x512xf32>
      %15 = arith.addf %12, %14 : vector<128x512xf32>
      %16 = arith.truncf %15 : vector<128x512xf32> to vector<128x512xbf16>
      %c0_14 = arith.constant 0 : index
      %c0_15 = arith.constant 0 : index
      %17 = vector.load %arg6[%c0_14, %c0_15] : memref<128x512xbf16, #tpu.memory_space<vmem>>, vector<128x512xbf16>
      tpu.vector_store %arg6[%c0_14, %c0_15], %16 {strides = array<i32>} : memref<128x512xbf16, #tpu.memory_space<vmem>>, vector<128x512xbf16>,
    } else {
    }
    return
  }
  func.func @transform_0(%arg0: i32, %arg1: i32, %arg2: i32) -> (i32, i32) {
    %c0_i32 = arith.constant 0 : i32
    return %arg0, %arg2 : i32, i32
  }
  func.func @transform_1(%arg0: i32, %arg1: i32, %arg2: i32) -> (i32, i32) {
    %c0_i32 = arith.constant 0 : i32
    return %arg2, %arg1 : i32, i32
  }
  func.func @transform_2(%arg0: i32, %arg1: i32, %arg2: i32) -> (i32, i32) {
    %c0_i32 = arith.constant 0 : i32
    %c0_i32_0 = arith.constant 0 : i32
    return %c0_i32, %arg1 : i32, i32
  }
  func.func @transform_3(%arg0: i32, %arg1: i32, %arg2: i32) -> (i32, i32) {
    %c0_i32 = arith.constant 0 : i32
    return %arg0, %arg1 : i32, i32
  }
}

</mosaic_0001>

<bundles_post_ra>
// kernel: tpu_custom_call.1
= control target key start
LH: loop header
LB: loop body
LE: loop exit
PB: predicated region body
PF: predicated region fallthrough
CT: control target
= control target key end

     0   :  { %8 = vsyncpa [#allocation4], 0  ;;  %s1626_s0 = inlined_call_operand.hbm [shape: bf16[128,128], index: 0, kind: input, shape index: {}]   ;;  %s1627_s1 = inlined_call_operand.hbm [shape: bf16[128,512], index: 1, kind: input, shape index: {}]   ;;  %s1628_s2 = inlined_call_operand.hbm [shape: f32[1,512], index: 2, kind: input, shape index: {}]   ;;  %s1629_s3 = inlined_call_operand.hbm [shape: bf16[128,512], index: 3, kind: output, shape index: {}]  }
   0x1   :  { %9 = vsyncpa [#allocation7], 0 }
   0x2   :  { %10 = vsyncpa [#allocation5], 0  ;;  %s1455_s12 = smov [#allocation6]   ;;  %s1361_s16 = scalar_lea.hbm %s1627_s1, 4096 }
   0x3   :  { %s28_s13 = sshll.u32 %s1455_s12, 4  ;;  %p1362_p0 = scmp.ne.s32.totalorder %s1627_s1, %s1361_s16  ;;  %s29_s13 = int_to_ptr.vmem [resolvable:$true] %s28_s13 }
   0x4   :  { %p1365_p1 = scmp.lt.u32.totalorder %s1361_s16, %s1627_s1 }
   0x6   :  { %p1367_p2 = pnand %p1365_p1, %p1362_p0 }
   0x8   :  { %1370 = shalt.err (!%p1367_p2)
}
   0x9   :  { %s1371_s21 = scalar_lea.vmem %s29_s13, 4096  ;;  %p1376_p4 = scmp.lt.s32.totalorder %s29_s13, %s29_s13 }
   0xa   :  { %p1372_p3 = scmp.ne.s32.totalorder %s29_s13, %s1371_s21  ;;  %p1377_p5 = scmp.lt.s32.totalorder %s1371_s21, %s1371_s21 }
   0xc   :  { %p1378_p6 = por %p1377_p5, %p1376_p4 }
   0xe   :  { %p1379_p7 = pnand %p1378_p6, %p1372_p3 }
  0x10   :  { %1382 = shalt.err (!%p1379_p7)
}
  0x11   :  { %s1456_s22 = smov 256   ;;  %s1457_s23 = smov 16  }
  0x12   :  { %34 = dma.hbm_to_vmem [thread:$0]  %s1627_s1, 4096, %s29_s13, [#allocation7], %s1456_s22, %s1456_s22, %s1457_s23  }
  0x13   :  { %s1458_s26 = smov [#allocation3]   ;;  %s1383_s30 = scalar_lea.hbm %s1626_s0, 1024 }
  0x14   :  { %s16_s27 = sshll.u32 %s1458_s26, 4  ;;  %p1384_p8 = scmp.ne.s32.totalorder %s1626_s0, %s1383_s30  ;;  %s17_s27 = int_to_ptr.vmem [resolvable:$true] %s16_s27 }
  0x15   :  { %p1387_p9 = scmp.lt.u32.totalorder %s1383_s30, %s1626_s0 }
  0x17   :  { %p1389_p10 = pnand %p1387_p9, %p1384_p8 }
  0x19   :  { %1392 = shalt.err (!%p1389_p10)
}
  0x1a   :  { %s1393_s8 = scalar_lea.vmem %s17_s27, 1024  ;;  %p1398_p12 = scmp.lt.s32.totalorder %s17_s27, %s17_s27 }
  0x1b   :  { %p1394_p11 = scmp.ne.s32.totalorder %s17_s27, %s1393_s8  ;;  %p1399_p13 = scmp.lt.s32.totalorder %s1393_s8, %s1393_s8 }
  0x1d   :  { %p1400_p0 = por %p1399_p13, %p1398_p12 }
  0x1f   :  { %p1401_p1 = pnand %p1400_p0, %p1394_p11 }
  0x21   :  { %1404 = shalt.err (!%p1401_p1)
}
  0x22   :  { %s1459_s1 = smov 64   ;;  %s1460_s9 = smov 4  }
  0x23   :  { %22 = dma.hbm_to_vmem [thread:$0]  %s1626_s0, 1024, %s17_s27, [#allocation4], %s1459_s1, %s1459_s1, %s1460_s9  }
  0x24   :  { %s1461_s12 = smov [#allocation8]   ;;  %s1405_s16 = scalar_lea.hbm %s1628_s2, 64 }
  0x25   :  { %s41_s13 = sshll.u32 %s1461_s12, 4  ;;  %p1406_p2 = scmp.ne.s32.totalorder %s1628_s2, %s1405_s16  ;;  %s42_s13 = int_to_ptr.vmem [resolvable:$true] %s41_s13 }
  0x26   :  { %p1409_p3 = scmp.lt.u32.totalorder %s1405_s16, %s1628_s2 }
  0x28   :  { %p1411_p4 = pnand %p1409_p3, %p1406_p2 }
  0x2a   :  { %1414 = shalt.err (!%p1411_p4)
}
  0x2b   :  { %s1415_s21 = scalar_lea.vmem %s42_s13, 64  ;;  %p1420_p6 = scmp.lt.s32.totalorder %s42_s13, %s42_s13 }
  0x2c   :  { %p1416_p5 = scmp.ne.s32.totalorder %s42_s13, %s1415_s21  ;;  %p1421_p7 = scmp.lt.s32.totalorder %s1415_s21, %s1415_s21 }
  0x2e   :  { %p1422_p8 = por %p1421_p7, %p1420_p6 }
  0x30   :  { %p1423_p9 = pnand %p1422_p8, %p1416_p5 }
  0x32   :  { %1426 = shalt.err (!%p1423_p9)
}
  0x33   :  { %44 = dma.hbm_to_vmem [thread:$0]  %s1628_s2, 64, %s42_s13, [#allocation7]  }
  0x34   :  { %1449 = dma.done.wait [#allocation4], 1024  }
  0x35   :  { %1450 = vsyncadd [#allocation4], 4294966272 }
  0x36   :  { %1451 = dma.done.wait [#allocation7], 4160  }
  0x37   :  { %1452 = vsyncadd [#allocation7], 4294963136  ;;  %v1462_v0 = vmov 0   ;;  %v1305_v1 = vld [vmem:[#allocation6 + $0x4] ss:$16 sps:$4 sm:$0xff]   ;;  %v1354_v34 = vld [vmem:[#allocation3 + $0x8] sm:$0xff]   ;;  %v866_v41 = vlaneseq }
  0x38   :  { %475 = vmatprep.mubr.bf16.mxu0 %v1462_v0  ;;  %588 = vmatprep.mubr.bf16.mxu1 %v1462_v0  ;;  %v1307_v2 = vld [vmem:[#allocation6 + $0xc] ss:$16 sps:$4 sm:$0xff]   ;;  %v1309_v3 = vld [vmem:[#allocation6] ss:$16 sps:$4 sm:$0xff]   ;;  %v1310_v4 = vld [vmem:[#allocation6 + $0x8] ss:$16 sps:$4 sm:$0xff]  }
  0x39   :  { %443 = vmatprep.subr.bf16.mxu0 %v1305_v1  ;;  %556 = vmatprep.subr.bf16.mxu1 %v1307_v2  ;;  %v1311_v5 = vld [vmem:[#allocation6 + $0x24] ss:$16 sps:$4 sm:$0xff]   ;;  %v1313_v6 = vld [vmem:[#allocation6 + $0x2c] ss:$16 sps:$4 sm:$0xff]   ;;  %v1315_v7 = vld [vmem:[#allocation6 + $0x20] ss:$16 sps:$4 sm:$0xff]  }
  0x3a   :  { %444 = vmatpush1.bf16.msra.mxu0 %v1309_v3  ;;  %557 = vmatpush1.bf16.msra.mxu1 %v1310_v4  ;;  %v1316_v8 = vld [vmem:[#allocation6 + $0x28] ss:$16 sps:$4 sm:$0xff]   ;;  %v1317_v9 = vld [vmem:[#allocation6 + $0x44] ss:$16 sps:$4 sm:$0xff]   ;;  %v1319_v10 = vld [vmem:[#allocation6 + $0x4c] ss:$16 sps:$4 sm:$0xff]  }
  0x3b   :  { %445 = vmatprep.subr.bf16.mxu0 %v1311_v5  ;;  %558 = vmatprep.subr.bf16.mxu1 %v1313_v6  ;;  %v1321_v11 = vld [vmem:[#allocation6 + $0x40] ss:$16 sps:$4 sm:$0xff]   ;;  %v1322_v12 = vld [vmem:[#allocation6 + $0x48] ss:$16 sps:$4 sm:$0xff]   ;;  %v1323_v13 = vld [vmem:[#allocation6 + $0x64] ss:$16 sps:$4 sm:$0xff]  }
  0x3c   :  { %v1325_v14 = vld [vmem:[#allocation6 + $0x6c] ss:$16 sps:$4 sm:$0xff]   ;;  %v1327_v15 = vld [vmem:[#allocation6 + $0x60] ss:$16 sps:$4 sm:$0xff]   ;;  %v1328_v16 = vld [vmem:[#allocation6 + $0x68] ss:$16 sps:$4 sm:$0xff]  }
  0x3d   :  { %v1329_v17 = vld [vmem:[#allocation6 + $0x84] ss:$16 sps:$4 sm:$0xff]   ;;  %v1331_v18 = vld [vmem:[#allocation6 + $0x8c] ss:$16 sps:$4 sm:$0xff]   ;;  %v1333_v19 = vld [vmem:[#allocation6 + $0x80] ss:$16 sps:$4 sm:$0xff]  }
  0x3e   :  { %446 = vmatpush1.bf16.msra.mxu0 %v1315_v7  ;;  %559 = vmatpush1.bf16.msra.mxu1 %v1316_v8  ;;  %v1334_v20 = vld [vmem:[#allocation6 + $0x88] ss:$16 sps:$4 sm:$0xff]   ;;  %v1335_v21 = vld [vmem:[#allocation6 + $0xa4] ss:$16 sps:$4 sm:$0xff]   ;;  %v1337_v22 = vld [vmem:[#allocation6 + $0xac] ss:$16 sps:$4 sm:$0xff]  }
  0x3f   :  { %447 = vmatprep.subr.bf16.mxu0 %v1317_v9  ;;  %560 = vmatprep.subr.bf16.mxu1 %v1319_v10  ;;  %v1339_v23 = vld [vmem:[#allocation6 + $0xa0] ss:$16 sps:$4 sm:$0xff]   ;;  %v1340_v24 = vld [vmem:[#allocation6 + $0xa8] ss:$16 sps:$4 sm:$0xff]   ;;  %v1341_v25 = vld [vmem:[#allocation6 + $0xc4] ss:$16 sps:$4 sm:$0xff]  }
  0x40   :  { %v1343_v26 = vld [vmem:[#allocation6 + $0xcc] ss:$16 sps:$4 sm:$0xff]   ;;  %v1345_v27 = vld [vmem:[#allocation6 + $0xc0] ss:$16 sps:$4 sm:$0xff]   ;;  %v1346_v28 = vld [vmem:[#allocation6 + $0xc8] ss:$16 sps:$4 sm:$0xff]  }
  0x41   :  { %v1347_v29 = vld [vmem:[#allocation6 + $0xe4] ss:$16 sps:$4 sm:$0xff]   ;;  %v1349_v30 = vld [vmem:[#allocation6 + $0xec] ss:$16 sps:$4 sm:$0xff]   ;;  %v1351_v31 = vld [vmem:[#allocation6 + $0xe0] ss:$16 sps:$4 sm:$0xff]  }
  0x42   :  { %448 = vmatpush1.bf16.msra.mxu0 %v1321_v11  ;;  %561 = vmatpush1.bf16.msra.mxu1 %v1322_v12  ;;  %v1352_v32 = vld [vmem:[#allocation6 + $0xe8] ss:$16 sps:$4 sm:$0xff]   ;;  %v1353_v33 = vld [vmem:[#allocation3] sm:$0xff]   ;;  %v1355_v35 = vld [vmem:[#allocation3 + $0x10] sm:$0xff]   ;;  %v867_v42 = vshrl.u32 %v866_v41, 7  ;;  %s1463_s2 = smov [#allocation9]  }
  0x43   :  { %449 = vmatprep.subr.bf16.mxu0 %v1323_v13  ;;  %562 = vmatprep.subr.bf16.mxu1 %v1325_v14  ;;  %v1356_v36 = vld [vmem:[#allocation3 + $0x18] sm:$0xff]   ;;  %v1357_v37 = vld [vmem:[#allocation3 + $0x20] sm:$0xff]   ;;  %v1358_v38 = vld [vmem:[#allocation3 + $0x28] sm:$0xff]   ;;  %s1179_s25 = sshll.u32 %s1463_s2, 4  ;;  %s1180_s25 = int_to_ptr.vmem [resolvable:$true] %s1179_s25 }
  0x44   :  { %v1359_v39 = vld [vmem:[#allocation3 + $0x30] sm:$0xff]   ;;  %v1360_v40 = vld [vmem:[#allocation3 + $0x38] sm:$0xff]   ;;  %v868_v43 = vsub.s32 0, %v867_v42  ;;  %v876_v44 = vsub.s32 2, %v867_v42  ;;  %v864_v45 = vld [vmem:[#allocation8] sm:$0xf]  ;;  %p1432_p11 = scmp.lt.s32.totalorder %s1180_s25, %s1180_s25 }
  0x45   :  { %v872_v46 = vsub.s32 1, %v867_v42  ;;  %v880_v47 = vsub.s32 3, %v867_v42  ;;  %s1427_s26 = scalar_lea.vmem %s1180_s25, 4096 }
  0x46   :  { %450 = vmatpush1.bf16.msra.mxu0 %v1327_v15  ;;  %563 = vmatpush1.bf16.msra.mxu1 %v1328_v16  ;;  %v1539_v48 = vrot.slane %v864_v45, %v868_v43  ;;  %v1541_v49 = vrot.slane %v864_v45, %v876_v44  ;;  %p1428_p10 = scmp.ne.s32.totalorder %s1180_s25, %s1427_s26  ;;  %p1433_p12 = scmp.lt.s32.totalorder %s1427_s26, %s1427_s26 }
  0x47   :  { %451 = vmatprep.subr.bf16.mxu0 %v1329_v17  ;;  %564 = vmatprep.subr.bf16.mxu1 %v1331_v18  ;;  %v1543_v50 = vrot.slane %v864_v45, %v872_v46  ;;  %v1545_v51 = vrot.slane %v864_v45, %v880_v47 }
  0x48   :  { %p1434_p13 = por %p1433_p12, %p1432_p11 }
  0x4a   :  { %452 = vmatpush1.bf16.msra.mxu0 %v1333_v19  ;;  %565 = vmatpush1.bf16.msra.mxu1 %v1334_v20  ;;  %p1435_p0 = pnand %p1434_p13, %p1428_p10 }
  0x4b   :  { %453 = vmatprep.subr.bf16.mxu0 %v1335_v21  ;;  %566 = vmatprep.subr.bf16.mxu1 %v1337_v22 }
  0x4e   :  { %454 = vmatpush1.bf16.msra.mxu0 %v1339_v23  ;;  %567 = vmatpush1.bf16.msra.mxu1 %v1340_v24 }
  0x4f   :  { %455 = vmatprep.subr.bf16.mxu0 %v1341_v25  ;;  %568 = vmatprep.subr.bf16.mxu1 %v1343_v26 }
  0x52   :  { %456 = vmatpush1.bf16.msra.mxu0 %v1345_v27  ;;  %569 = vmatpush1.bf16.msra.mxu1 %v1346_v28 }
  0x53   :  { %457 = vmatprep.subr.bf16.mxu0 %v1347_v29  ;;  %570 = vmatprep.subr.bf16.mxu1 %v1349_v30 }
  0x56   :  { %458 = vmatpush1.bf16.msra.mxu0 %v1351_v31  ;;  %571 = vmatpush1.bf16.msra.mxu1 %v1352_v32 }
  0x59   :  { %476 = vmatmul.mubr.bf16.vlgmr.msra.gmra.mrb[0].mxu0 %v1353_v33  ;;  %589 = vmatmul.mubr.bf16.vlgmr.msra.gmra.mrb[0].mxu1 %v1353_v33 }
  0x5a   :  { %485 = vmatprep.mubr.bf16.mxu0 %v1462_v0  ;;  %598 = vmatprep.mubr.bf16.mxu1 %v1462_v0 }
  0x61   :  { %486 = vmatmul.mubr.bf16.gmra.mrb[4].mxu0 %v1354_v34  ;;  %599 = vmatmul.mubr.bf16.gmra.mrb[4].mxu1 %v1354_v34 }
  0x62   :  { %495 = vmatprep.mubr.bf16.mxu0 %v1462_v0  ;;  %608 = vmatprep.mubr.bf16.mxu1 %v1462_v0 }
  0x69   :  { %496 = vmatmul.mubr.bf16.gmra.mrb[8].mxu0 %v1355_v35  ;;  %609 = vmatmul.mubr.bf16.gmra.mrb[8].mxu1 %v1355_v35 }
  0x6a   :  { %505 = vmatprep.mubr.bf16.mxu0 %v1462_v0  ;;  %618 = vmatprep.mubr.bf16.mxu1 %v1462_v0 }
  0x71   :  { %506 = vmatmul.mubr.bf16.gmra.mrb[12].mxu0 %v1356_v36  ;;  %619 = vmatmul.mubr.bf16.gmra.mrb[12].mxu1 %v1356_v36 }
  0x72   :  { %515 = vmatprep.mubr.bf16.mxu0 %v1462_v0  ;;  %628 = vmatprep.mubr.bf16.mxu1 %v1462_v0 }
  0x79   :  { %516 = vmatmul.mubr.bf16.gmra.mrb[16].mxu0 %v1357_v37  ;;  %629 = vmatmul.mubr.bf16.gmra.mrb[16].mxu1 %v1357_v37 }
  0x7a   :  { %525 = vmatprep.mubr.bf16.mxu0 %v1462_v0  ;;  %638 = vmatprep.mubr.bf16.mxu1 %v1462_v0 }
  0x81   :  { %526 = vmatmul.mubr.bf16.gmra.mrb[20].mxu0 %v1358_v38  ;;  %639 = vmatmul.mubr.bf16.gmra.mrb[20].mxu1 %v1358_v38 }
  0x82   :  { %535 = vmatprep.mubr.bf16.mxu0 %v1462_v0  ;;  %648 = vmatprep.mubr.bf16.mxu1 %v1462_v0 }
  0x89   :  { %536 = vmatmul.mubr.bf16.gmra.mrb[24].mxu0 %v1359_v39  ;;  %649 = vmatmul.mubr.bf16.gmra.mrb[24].mxu1 %v1359_v39 }
  0x8a   :  { %545 = vmatprep.mubr.bf16.mxu0 %v1462_v0  ;;  %658 = vmatprep.mubr.bf16.mxu1 %v1462_v0 }
  0x91   :  { %546 = vmatmul.mubr.bf16.gmra.mrb[28].mxu0 %v1360_v40  ;;  %659 = vmatmul.mubr.bf16.gmra.mrb[28].mxu1 %v1360_v40 }
 0x12c   :  { %v477_v52 = vpop.f32.mrb[0].mxu0  ;;  %v590_v53 = vpop.f32.mrb[0].mxu1 }
 0x12d   :  { %v886_v54 = vadd.f32 %v1539_v48, %v477_v52  ;;  %v888_v55 = vadd.f32 %v1541_v49, %v590_v53  ;;  %v479_v56 = vpop.f32.mrb[1].mxu0  ;;  %v592_v57 = vpop.f32.mrb[1].mxu1 }
 0x12e   :  { %v887_v58 = vadd.f32 %v1543_v50, %v479_v56  ;;  %v889_v59 = vadd.f32 %v1545_v51, %v592_v57  ;;  %v481_v60 = vpop.f32.mrb[2].mxu0  ;;  %v594_v61 = vpop.f32.mrb[2].mxu1 }
 0x12f   :  { %v890_v62 = vadd.f32 %v1539_v48, %v481_v60  ;;  %v892_v63 = vadd.f32 %v1541_v49, %v594_v61  ;;  %v483_v0 = vpop.f32.mrb[3].mxu0  ;;  %v596_v1 = vpop.f32.mrb[3].mxu1 }
 0x130   :  { %v1264_v2 = vpack.c.bf16 %v887_v58, %v886_v54  ;;  %v1265_v3 = vpack.c.bf16 %v889_v59, %v888_v55  ;;  %v891_v4 = vadd.f32 %v1543_v50, %v483_v0  ;;  %v893_v5 = vadd.f32 %v1545_v51, %v596_v1 }
 0x132   :  { %1142 = vst [vmem:[#allocation9] sm:$0xff] %v1264_v2  ;;  %1143 = vst [vmem:[#allocation9 + $0x8] sm:$0xff] %v1265_v3  ;;  %v1266_v6 = vpack.c.bf16 %v891_v4, %v890_v62  ;;  %v1267_v7 = vpack.c.bf16 %v893_v5, %v892_v63 }
 0x134   :  { %1144 = vst [vmem:[#allocation9 + $0x10] sm:$0xff] %v1266_v6  ;;  %1145 = vst [vmem:[#allocation9 + $0x18] sm:$0xff] %v1267_v7  ;;  %v487_v8 = vpop.f32.mrb[4].mxu0  ;;  %v600_v9 = vpop.f32.mrb[4].mxu1 }
 0x135   :  { %v894_v10 = vadd.f32 %v1539_v48, %v487_v8  ;;  %v896_v11 = vadd.f32 %v1541_v49, %v600_v9  ;;  %v489_v12 = vpop.f32.mrb[5].mxu0  ;;  %v602_v13 = vpop.f32.mrb[5].mxu1 }
 0x136   :  { %v895_v14 = vadd.f32 %v1543_v50, %v489_v12  ;;  %v897_v15 = vadd.f32 %v1545_v51, %v602_v13  ;;  %v491_v16 = vpop.f32.mrb[6].mxu0  ;;  %v604_v17 = vpop.f32.mrb[6].mxu1 }
 0x137   :  { %v898_v18 = vadd.f32 %v1539_v48, %v491_v16  ;;  %v900_v19 = vadd.f32 %v1541_v49, %v604_v17  ;;  %v493_v20 = vpop.f32.mrb[7].mxu0  ;;  %v606_v21 = vpop.f32.mrb[7].mxu1 }
 0x138   :  { %v1268_v22 = vpack.c.bf16 %v895_v14, %v894_v10  ;;  %v1269_v23 = vpack.c.bf16 %v897_v15, %v896_v11  ;;  %v899_v24 = vadd.f32 %v1543_v50, %v493_v20  ;;  %v901_v25 = vadd.f32 %v1545_v51, %v606_v21 }
 0x13a   :  { %1146 = vst [vmem:[#allocation9 + $0x20] sm:$0xff] %v1268_v22  ;;  %1147 = vst [vmem:[#allocation9 + $0x28] sm:$0xff] %v1269_v23  ;;  %v1270_v26 = vpack.c.bf16 %v899_v24, %v898_v18  ;;  %v1271_v27 = vpack.c.bf16 %v901_v25, %v900_v19 }
 0x13c   :  { %1148 = vst [vmem:[#allocation9 + $0x30] sm:$0xff] %v1270_v26  ;;  %1149 = vst [vmem:[#allocation9 + $0x38] sm:$0xff] %v1271_v27  ;;  %v497_v28 = vpop.f32.mrb[8].mxu0  ;;  %v610_v29 = vpop.f32.mrb[8].mxu1 }
 0x13d   :  { %v902_v30 = vadd.f32 %v1539_v48, %v497_v28  ;;  %v904_v31 = vadd.f32 %v1541_v49, %v610_v29  ;;  %v499_v32 = vpop.f32.mrb[9].mxu0  ;;  %v612_v33 = vpop.f32.mrb[9].mxu1 }
 0x13e   :  { %v903_v34 = vadd.f32 %v1543_v50, %v499_v32  ;;  %v905_v35 = vadd.f32 %v1545_v51, %v612_v33  ;;  %v501_v36 = vpop.f32.mrb[10].mxu0  ;;  %v614_v37 = vpop.f32.mrb[10].mxu1 }
 0x13f   :  { %v906_v38 = vadd.f32 %v1539_v48, %v501_v36  ;;  %v908_v39 = vadd.f32 %v1541_v49, %v614_v37  ;;  %v503_v40 = vpop.f32.mrb[11].mxu0  ;;  %v616_v41 = vpop.f32.mrb[11].mxu1 }
 0x140   :  { %v1272_v42 = vpack.c.bf16 %v903_v34, %v902_v30  ;;  %v1273_v43 = vpack.c.bf16 %v905_v35, %v904_v31  ;;  %v907_v44 = vadd.f32 %v1543_v50, %v503_v40  ;;  %v909_v45 = vadd.f32 %v1545_v51, %v616_v41 }
 0x142   :  { %1150 = vst [vmem:[#allocation9 + $0x40] sm:$0xff] %v1272_v42  ;;  %1151 = vst [vmem:[#allocation9 + $0x48] sm:$0xff] %v1273_v43  ;;  %v1274_v46 = vpack.c.bf16 %v907_v44, %v906_v38  ;;  %v1275_v47 = vpack.c.bf16 %v909_v45, %v908_v39 }
 0x144   :  { %1152 = vst [vmem:[#allocation9 + $0x50] sm:$0xff] %v1274_v46  ;;  %1153 = vst [vmem:[#allocation9 + $0x58] sm:$0xff] %v1275_v47  ;;  %v507_v52 = vpop.f32.mrb[12].mxu0  ;;  %v620_v53 = vpop.f32.mrb[12].mxu1 }
 0x145   :  { %v910_v54 = vadd.f32 %v1539_v48, %v507_v52  ;;  %v912_v55 = vadd.f32 %v1541_v49, %v620_v53  ;;  %v509_v56 = vpop.f32.mrb[13].mxu0  ;;  %v622_v57 = vpop.f32.mrb[13].mxu1 }
 0x146   :  { %v911_v58 = vadd.f32 %v1543_v50, %v509_v56  ;;  %v913_v59 = vadd.f32 %v1545_v51, %v622_v57  ;;  %v511_v60 = vpop.f32.mrb[14].mxu0  ;;  %v624_v61 = vpop.f32.mrb[14].mxu1 }
 0x147   :  { %v914_v62 = vadd.f32 %v1539_v48, %v511_v60  ;;  %v916_v63 = vadd.f32 %v1541_v49, %v624_v61  ;;  %v513_v0 = vpop.f32.mrb[15].mxu0  ;;  %v626_v1 = vpop.f32.mrb[15].mxu1 }
 0x148   :  { %v1276_v2 = vpack.c.bf16 %v911_v58, %v910_v54  ;;  %v1277_v3 = vpack.c.bf16 %v913_v59, %v912_v55  ;;  %v915_v4 = vadd.f32 %v1543_v50, %v513_v0  ;;  %v917_v5 = vadd.f32 %v1545_v51, %v626_v1 }
 0x14a   :  { %1154 = vst [vmem:[#allocation9 + $0x60] sm:$0xff] %v1276_v2  ;;  %1155 = vst [vmem:[#allocation9 + $0x68] sm:$0xff] %v1277_v3  ;;  %v1278_v6 = vpack.c.bf16 %v915_v4, %v914_v62  ;;  %v1279_v7 = vpack.c.bf16 %v917_v5, %v916_v63 }
 0x14c   :  { %1156 = vst [vmem:[#allocation9 + $0x70] sm:$0xff] %v1278_v6  ;;  %1157 = vst [vmem:[#allocation9 + $0x78] sm:$0xff] %v1279_v7  ;;  %v517_v8 = vpop.f32.mrb[16].mxu0  ;;  %v630_v9 = vpop.f32.mrb[16].mxu1 }
 0x14d   :  { %v918_v10 = vadd.f32 %v1539_v48, %v517_v8  ;;  %v920_v11 = vadd.f32 %v1541_v49, %v630_v9  ;;  %v519_v12 = vpop.f32.mrb[17].mxu0  ;;  %v632_v13 = vpop.f32.mrb[17].mxu1 }
 0x14e   :  { %v919_v14 = vadd.f32 %v1543_v50, %v519_v12  ;;  %v921_v15 = vadd.f32 %v1545_v51, %v632_v13  ;;  %v521_v16 = vpop.f32.mrb[18].mxu0  ;;  %v634_v17 = vpop.f32.mrb[18].mxu1 }
 0x14f   :  { %v922_v18 = vadd.f32 %v1539_v48, %v521_v16  ;;  %v924_v19 = vadd.f32 %v1541_v49, %v634_v17  ;;  %v523_v20 = vpop.f32.mrb[19].mxu0  ;;  %v636_v21 = vpop.f32.mrb[19].mxu1 }
 0x150   :  { %v1280_v22 = vpack.c.bf16 %v919_v14, %v918_v10  ;;  %v1281_v23 = vpack.c.bf16 %v921_v15, %v920_v11  ;;  %v923_v24 = vadd.f32 %v1543_v50, %v523_v20  ;;  %v925_v25 = vadd.f32 %v1545_v51, %v636_v21 }
 0x152   :  { %1158 = vst [vmem:[#allocation9 + $0x80] sm:$0xff] %v1280_v22  ;;  %1159 = vst [vmem:[#allocation9 + $0x88] sm:$0xff] %v1281_v23  ;;  %v1282_v26 = vpack.c.bf16 %v923_v24, %v922_v18  ;;  %v1283_v27 = vpack.c.bf16 %v925_v25, %v924_v19 }
 0x154   :  { %1160 = vst [vmem:[#allocation9 + $0x90] sm:$0xff] %v1282_v26  ;;  %1161 = vst [vmem:[#allocation9 + $0x98] sm:$0xff] %v1283_v27  ;;  %v527_v28 = vpop.f32.mrb[20].mxu0  ;;  %v640_v29 = vpop.f32.mrb[20].mxu1 }
 0x155   :  { %v926_v30 = vadd.f32 %v1539_v48, %v527_v28  ;;  %v928_v31 = vadd.f32 %v1541_v49, %v640_v29  ;;  %v529_v32 = vpop.f32.mrb[21].mxu0  ;;  %v642_v33 = vpop.f32.mrb[21].mxu1 }
 0x156   :  { %v927_v34 = vadd.f32 %v1543_v50, %v529_v32  ;;  %v929_v35 = vadd.f32 %v1545_v51, %v642_v33  ;;  %v531_v36 = vpop.f32.mrb[22].mxu0  ;;  %v644_v37 = vpop.f32.mrb[22].mxu1 }
 0x157   :  { %v930_v38 = vadd.f32 %v1539_v48, %v531_v36  ;;  %v932_v39 = vadd.f32 %v1541_v49, %v644_v37  ;;  %v533_v40 = vpop.f32.mrb[23].mxu0  ;;  %v646_v41 = vpop.f32.mrb[23].mxu1 }
 0x158   :  { %v1284_v42 = vpack.c.bf16 %v927_v34, %v926_v30  ;;  %v1285_v43 = vpack.c.bf16 %v929_v35, %v928_v31  ;;  %v931_v44 = vadd.f32 %v1543_v50, %v533_v40  ;;  %v933_v45 = vadd.f32 %v1545_v51, %v646_v41 }
 0x15a   :  { %1162 = vst [vmem:[#allocation9 + $0xa0] sm:$0xff] %v1284_v42  ;;  %1163 = vst [vmem:[#allocation9 + $0xa8] sm:$0xff] %v1285_v43  ;;  %v1286_v46 = vpack.c.bf16 %v931_v44, %v930_v38  ;;  %v1287_v47 = vpack.c.bf16 %v933_v45, %v932_v39 }
 0x15c   :  { %1164 = vst [vmem:[#allocation9 + $0xb0] sm:$0xff] %v1286_v46  ;;  %1165 = vst [vmem:[#allocation9 + $0xb8] sm:$0xff] %v1287_v47  ;;  %v537_v52 = vpop.f32.mrb[24].mxu0  ;;  %v650_v53 = vpop.f32.mrb[24].mxu1 }
 0x15d   :  { %v934_v54 = vadd.f32 %v1539_v48, %v537_v52  ;;  %v936_v55 = vadd.f32 %v1541_v49, %v650_v53  ;;  %v539_v56 = vpop.f32.mrb[25].mxu0  ;;  %v652_v57 = vpop.f32.mrb[25].mxu1 }
 0x15e   :  { %v935_v58 = vadd.f32 %v1543_v50, %v539_v56  ;;  %v937_v59 = vadd.f32 %v1545_v51, %v652_v57  ;;  %v541_v60 = vpop.f32.mrb[26].mxu0  ;;  %v654_v61 = vpop.f32.mrb[26].mxu1 }
 0x15f   :  { %v938_v62 = vadd.f32 %v1539_v48, %v541_v60  ;;  %v940_v63 = vadd.f32 %v1541_v49, %v654_v61  ;;  %v543_v0 = vpop.f32.mrb[27].mxu0  ;;  %v656_v1 = vpop.f32.mrb[27].mxu1 }
 0x160   :  { %v1288_v2 = vpack.c.bf16 %v935_v58, %v934_v54  ;;  %v1289_v3 = vpack.c.bf16 %v937_v59, %v936_v55  ;;  %v939_v4 = vadd.f32 %v1543_v50, %v543_v0  ;;  %v941_v5 = vadd.f32 %v1545_v51, %v656_v1 }
 0x162   :  { %1166 = vst [vmem:[#allocation9 + $0xc0] sm:$0xff] %v1288_v2  ;;  %1167 = vst [vmem:[#allocation9 + $0xc8] sm:$0xff] %v1289_v3  ;;  %v1290_v6 = vpack.c.bf16 %v939_v4, %v938_v62  ;;  %v1291_v7 = vpack.c.bf16 %v941_v5, %v940_v63 }
 0x164   :  { %1168 = vst [vmem:[#allocation9 + $0xd0] sm:$0xff] %v1290_v6  ;;  %1169 = vst [vmem:[#allocation9 + $0xd8] sm:$0xff] %v1291_v7  ;;  %v547_v8 = vpop.f32.mrb[28].mxu0  ;;  %v660_v9 = vpop.f32.mrb[28].mxu1 }
 0x165   :  { %v942_v10 = vadd.f32 %v1539_v48, %v547_v8  ;;  %v944_v11 = vadd.f32 %v1541_v49, %v660_v9  ;;  %v549_v12 = vpop.f32.mrb[29].mxu0  ;;  %v662_v13 = vpop.f32.mrb[29].mxu1 }
 0x166   :  { %v943_v14 = vadd.f32 %v1543_v50, %v549_v12  ;;  %v945_v15 = vadd.f32 %v1545_v51, %v662_v13  ;;  %v551_v16 = vpop.f32.mrb[30].mxu0  ;;  %v664_v17 = vpop.f32.mrb[30].mxu1 }
 0x167   :  { %v946_v18 = vadd.f32 %v1539_v48, %v551_v16  ;;  %v948_v19 = vadd.f32 %v1541_v49, %v664_v17  ;;  %v553_v20 = vpop.f32.mrb[31].mxu0  ;;  %v666_v21 = vpop.f32.mrb[31].mxu1 }
 0x168   :  { %v1292_v22 = vpack.c.bf16 %v943_v14, %v942_v10  ;;  %v1293_v23 = vpack.c.bf16 %v945_v15, %v944_v11  ;;  %v947_v24 = vadd.f32 %v1543_v50, %v553_v20  ;;  %v949_v25 = vadd.f32 %v1545_v51, %v666_v21 }
 0x16a   :  { %1170 = vst [vmem:[#allocation9 + $0xe0] sm:$0xff] %v1292_v22  ;;  %1171 = vst [vmem:[#allocation9 + $0xe8] sm:$0xff] %v1293_v23  ;;  %v1294_v26 = vpack.c.bf16 %v947_v24, %v946_v18  ;;  %v1295_v27 = vpack.c.bf16 %v949_v25, %v948_v19 }
 0x16c   :  { %1172 = vst [vmem:[#allocation9 + $0xf0] sm:$0xff] %v1294_v26  ;;  %1173 = vst [vmem:[#allocation9 + $0xf8] sm:$0xff] %v1295_v27 }
 0x16d   :  { %1438 = shalt.err (!%p1435_p0)
}
 0x16e   :  { %s1439_s29 = scalar_lea.hbm %s1629_s3, 4096 }
 0x16f   :  { %p1440_p1 = scmp.ne.s32.totalorder %s1629_s3, %s1439_s29  ;;  %p1443_p2 = scmp.lt.u32.totalorder %s1439_s29, %s1629_s3 }
 0x171   :  { %p1445_p3 = pnand %p1443_p2, %p1440_p1 }
 0x173   :  { %1448 = shalt.err (!%p1445_p3)
}
 0x174   :  { %1185 = dma.vmem_to_hbm [thread:$0]  %s1180_s25, 4096, %s1629_s3, [#allocation5], %s1456_s22, %s1456_s22, %s1457_s23  }
 0x175   :  { %1453 = dma.done.wait [#allocation5], 4096  }
 0x176   :  { %1454 = vsyncadd [#allocation5], 4294963200 }
 0x177   :  { %1189 = vsyncpa [#allocation4], 1 }
 0x178   :  { %1190 = vsyncpa [#allocation7], 1 }
 0x179   :  { %1191 = vsyncpa [#allocation5], 1 }

</bundles_post_ra>
